<compile_context>
chip_gen: v5e
topology: v5e:2x2
jax: 0.10.0
libtpu: 0.0.40
codegen_flags: <defaults>
</compile_context>

<pallas_src>
import functools

import jax
import jax.numpy as jnp
from jax.experimental import pallas as pl
from jax.experimental.pallas import tpu as pltpu

n_embd = 64


def _detect_tensorcores():
    """Best-effort TensorCore count (v7x has 2 per chip, v5e/v6e have 1)."""
    try:
        kind = jax.devices()[0].device_kind.lower()
        return 2 if "v7" in kind else 1
    except Exception:  # pragma: no cover - defensive
        return 1


# ----------------------------------------------------------------------------
# Fused kernel: one grid step per batch group (default: whole batch).
# Input rows are parity-permuted per batch: [t=0,2,..,T-2, t=1,3,..,T-1].
#   qkv  = x @ W_qkv                      (one lane-dense (E, 3*H*D) matmul)
#   per (b, h): s = q @ k^T (scale pre-folded), causal mask (in permuted
#               coords), softmax, o = p @ v, normalise AFTER P@V,
#               acc += o @ W_proj[hD:(h+1)D, :]    (bias folded into acc init)
#   store: lane-concat even-t / odd-t halves -> (T/2, 2E)=(T/2,128) dense rows
# ----------------------------------------------------------------------------
def _mha_fused_kernel(x_ref, wqkv_ref, wproj_ref, b_ref, o_ref, *,
                      num_heads, head_size, seq_len, batch_per_step):
    H, D, T, Bg = num_heads, head_size, seq_len, batch_per_step
    T2 = T // 2
    hd = H * D

    x = x_ref[...]            # (Bg*T, E)   bf16, rows parity-permuted per batch
    wqkv = wqkv_ref[...]      # (E, 3*H*D)  bf16, columns [Q(scaled) | V | K]
    wp = wproj_ref[...]       # (H*D, E)    bf16
    bias = b_ref[...]         # (1, E)      f32
    E = bias.shape[-1]

    # Fused Q/K/V projection for all rows of the batch group: one MXU pass,
    # f32 accumulation.  Columns ordered [Q | V | K] so K starts at lane 128.
    qkv = jnp.dot(x, wqkv, preferred_element_type=jnp.float32)   # (Bg*T, 3*HD)
    q = qkv[:, 0 * hd:1 * hd].astype(jnp.bfloat16)
    v = qkv[:, 1 * hd:2 * hd].astype(jnp.bfloat16)
    k = qkv[:, 2 * hd:3 * hd].astype(jnp.bfloat16)

    # Causal mask in parity-permuted coordinates, built once, reused by every
    # (batch, head).  Permuted position p maps to original timestep:
    #   orig(p) = 2p       for p <  T/2   (even timesteps)
    #   orig(p) = 2(p-T/2)+1 for p >= T/2 (odd timesteps)
    ri = jax.lax.broadcasted_iota(jnp.int32, (T, T), 0)
    ci = jax.lax.broadcasted_iota(jnp.int32, (T, T), 1)
    r_t = jnp.where(ri < T2, 2 * ri, 2 * (ri - T2) + 1)
    c_t = jnp.where(ci < T2, 2 * ci, 2 * (ci - T2) + 1)
    causal = r_t >= c_t

    # Bias broadcast hoisted out of the loops (JAX does not CSE broadcasts).
    bias_tile = jnp.broadcast_to(bias, (T, E))                   # (T, E) f32

    outs = []
    for b in range(Bg):                       # static, small
        rows = slice(b * T, (b + 1) * T)
        acc = bias_tile                       # (T, E) f32; bias folded in
        for h in range(H):                    # static, small
            cols = slice(h * D, (h + 1) * D)
            q_bh = q[rows, cols]              # (T, D) bf16
            k_bh = k[rows, cols]              # (T, D) bf16
            v_bh = v[rows, cols]              # (T, D) bf16

            # Scores: 1/sqrt(D) already folded into the Q weight columns.
            s = jnp.dot(q_bh, k_bh.T,
                        preferred_element_type=jnp.float32)      # (T, T) f32
            s = jnp.where(causal, s, jnp.float32(-1e30))
            m = jnp.max(s, axis=-1, keepdims=True)
            p = jnp.exp(s - m)                                   # <= 1, f32
            denom = jnp.sum(p, axis=-1, keepdims=True)

            o = jnp.dot(p.astype(jnp.bfloat16), v_bh,
                        preferred_element_type=jnp.float32)      # (T, D) f32
            # Normalise AFTER P@V: T*D multiplies instead of T*T.
            o = o * pl.reciprocal(denom, approx=True)            # EUP slot

            # Per-head accumulation into the output projection
            # (W_proj row slice is a cheap sublane slice, multiple of 8).
            acc = acc + jnp.dot(o.astype(jnp.bfloat16), wp[cols, :],
                                preferred_element_type=jnp.float32)

        # acc rows are ordered [t even | t odd]; lane-concat the halves so
        # packed[i] = [out[t=2i] | out[t=2i+1]]  ->  lane-dense (T/2, 2E)
        # rows whose bytes are exactly (T, E) row-major.
        packed = jnp.concatenate([acc[:T2, :], acc[T2:, :]], axis=-1)
        outs.append(packed)

    out = outs[0] if Bg == 1 else jnp.concatenate(outs, axis=0)  # (Bg*T/2, 2E)
    o_ref[...] = out.astype(o_ref.dtype)


def multi_head_attention(x, params, *, grid_steps=None):
    """x: (B, T, E) f32; params as produced in __main__  ->  (B, T, E) f32."""
    wq, wk, wv, w_proj, b_proj = (
        params["wq"], params["wk"], params["wv"],
        params["w_proj"], params["b_proj"],
    )
    B, T, E = x.shape
    H, _, D = wq.shape
    HD = H * D
    assert T % 2 == 0, "lane-dense packing pairs consecutive timesteps"
    T2 = T // 2

    # ---- grid selection ----------------------------------------------------
    # v5e/v6e (1 TC): collapse the whole batch into one grid step (fewer
    # per-step overheads, bigger M per matmul).  v7x (2 TCs): one step per
    # TensorCore, B/2 batch elements each, provided blocks stay (8,*)-aligned.
    if grid_steps is None:
        grid_steps = _detect_tensorcores()
    grid_steps = max(int(grid_steps), 1)
    if B % grid_steps != 0:
        grid_steps = 1
    Bg = B // grid_steps
    if grid_steps > 1 and (Bg * T2) % 8 != 0:
        grid_steps, Bg = 1, B          # keep output blocks sublane-aligned

    # ---- one-time weight / input preprocessing (plain JAX, outside kernel) -
    scale = 1.0 / jnp.sqrt(jnp.float32(D))
    # (H, E, D) -> (E, H*D) so head h occupies columns [h*D, (h+1)*D).
    wq_f = jnp.transpose(wq, (1, 0, 2)).reshape(E, HD) * scale   # fold scale
    wk_f = jnp.transpose(wk, (1, 0, 2)).reshape(E, HD)
    wv_f = jnp.transpose(wv, (1, 0, 2)).reshape(E, HD)
    # Column order [Q | V | K]: K starts at lane offset 2*HD (=128 for E=64).
    w_qkv = jnp.concatenate([wq_f, wv_f, wk_f], axis=-1).astype(jnp.bfloat16)
    # torch Linear weight is (out, in); kernel wants (in, out).
    w_proj_t = jnp.transpose(w_proj, (1, 0)).astype(jnp.bfloat16)  # (HD, E)
    bias = b_proj.reshape(1, E).astype(jnp.float32)

    # Parity-permute rows within each batch element: [0,2,..,T-2, 1,3,..,T-1].
    # This lets the kernel emit 128-lane-dense output rows whose bytes are
    # already (B, T, E) row-major (layout plumbing only, no extra compute).
    x_perm = (x.reshape(B, T2, 2, E).transpose(0, 2, 1, 3)
                .reshape(B * T, E).astype(jnp.bfloat16))

    kernel = functools.partial(_mha_fused_kernel, num_heads=H, head_size=D,
                               seq_len=T, batch_per_step=Bg)

    out_packed = pl.pallas_call(
        kernel,
        # Lane-dense output: (B*T/2, 2E) rows (2E = 128 for n_embd = 64).
        out_shape=jax.ShapeDtypeStruct((B * T2, 2 * E), jnp.float32),
        grid_spec=pltpu.PrefetchScalarGridSpec(
            num_scalar_prefetch=0,
            grid=(grid_steps,),
            in_specs=[
                pl.BlockSpec((Bg * T, E), lambda g: (g, 0)),
                # constant block index -> weights stay resident, not re-DMA'd
                pl.BlockSpec((E, 3 * HD), lambda g: (0, 0)),
                pl.BlockSpec((HD, E), lambda g: (0, 0)),
                pl.BlockSpec((1, E), lambda g: (0, 0)),
            ],
            out_specs=pl.BlockSpec((Bg * T2, 2 * E), lambda g: (g, 0)),
        ),
        compiler_params=pltpu.CompilerParams(
            dimension_semantics=("parallel",),       # batch groups -> TCs
            vmem_limit_bytes=32 * 1024 * 1024,       # explicit scoped limit
        ),
    )(x_perm, w_qkv, w_proj_t, bias)

    # Free reshape: packed row (b, i) = [out[b,2i,:], out[b,2i+1,:]].
    return out_packed.reshape(B, T, E)


# ----------------------------------------------------------------------------
# Pure-JAX f32 reference for a sanity check
# ----------------------------------------------------------------------------
def reference(x, params):
    wq, wk, wv, w_proj, b_proj = (
        params["wq"], params["wk"], params["wv"],
        params["w_proj"], params["b_proj"],
    )
    B, T, E = x.shape
    H, _, D = wq.shape
    q = jnp.einsum("bte,hed->bhtd", x, wq)
    k = jnp.einsum("bte,hed->bhtd", x, wk)
    v = jnp.einsum("bte,hed->bhtd", x, wv)
    s = jnp.einsum("bhqd,bhkd->bhqk", q, k) / jnp.sqrt(jnp.float32(D))
    mask = jnp.tril(jnp.ones((T, T), dtype=bool))
    s = jnp.where(mask[None, None], s, -jnp.inf)
    p = jax.nn.softmax(s, axis=-1)
    o = jnp.einsum("bhqk,bhkd->bhqd", p, v)
    o = jnp.transpose(o, (0, 2, 1, 3)).reshape(B, T, H * D)
    return o @ w_proj.T + b_proj


if __name__ == "__main__":
    # Small shapes consistent with the module: n_embd=64, 4 heads of size 16.
    B, T, E = 2, 8, n_embd
    num_heads, head_size = 4, 16

    key = jax.random.PRNGKey(0)
    kx, kq, kk, kv, kp, kb = jax.random.split(key, 6)

    x = jax.random.normal(kx, (B, T, E), dtype=jnp.float32)
    params = {
        # per-head projection weights stored as (H, E, D) = (H, in, out)
        "wq": jax.random.normal(kq, (num_heads, E, head_size), jnp.float32) * 0.1,
        "wk": jax.random.normal(kk, (num_heads, E, head_size), jnp.float32) * 0.1,
        "wv": jax.random.normal(kv, (num_heads, E, head_size), jnp.float32) * 0.1,
        # torch-style Linear weight (out_features, in_features) and bias
        "w_proj": jax.random.normal(kp, (E, num_heads * head_size), jnp.float32) * 0.1,
        "b_proj": jax.random.normal(kb, (E,), jnp.float32) * 0.1,
    }

    out = multi_head_attention(x, params)
    out = jax.block_until_ready(out)

    ref = reference(x, params)
    assert out.shape == (B, T, E)
    # bf16 MXU operands / f32 accumulation -> looser tolerance than pure f32.
    assert jnp.allclose(out, ref, atol=5e-2, rtol=5e-2), "mismatch vs reference"

    print("KERNEL_OK")
</pallas_src>

<mosaic_0001>
module attributes {stable_mosaic.version = 11 : i64} {
  func.func @_mha_fused_kernel(%arg0: i32, %arg1: memref<16x64xbf16, #tpu.memory_space<vmem>>, %arg2: memref<64x192xbf16, #tpu.memory_space<vmem>>, %arg3: memref<64x64xbf16, #tpu.memory_space<vmem>>, %arg4: memref<1x64xf32, #tpu.memory_space<vmem>>, %arg5: memref<8x128xf32, #tpu.memory_space<vmem>>) attributes {dimension_semantics = [#tpu.dimension_semantics<parallel>], iteration_bounds = array<i64: 1>, scalar_prefetch = 0 : i64, scratch_operands = 0 : i64, tpu.core_type = #tpu.core_type<tc>, window_params = [{transform_indices = @transform_0, window_bounds = array<i64: 16, 64>}, {pipeline_mode = #tpu.pipeline_mode<synchronous>, transform_indices = @transform_1, window_bounds = array<i64: 64, 192>}, {pipeline_mode = #tpu.pipeline_mode<synchronous>, transform_indices = @transform_2, window_bounds = array<i64: 64, 64>}, {pipeline_mode = #tpu.pipeline_mode<synchronous>, transform_indices = @transform_3, window_bounds = array<i64: 1, 64>}, {transform_indices = @transform_4, window_bounds = array<i64: 8, 128>}]} {
    %c0 = arith.constant 0 : index
    %c0_0 = arith.constant 0 : index
    %0 = vector.load %arg1[%c0, %c0_0] : memref<16x64xbf16, #tpu.memory_space<vmem>>, vector<16x64xbf16>
    %c0_1 = arith.constant 0 : index
    %c0_2 = arith.constant 0 : index
    %1 = vector.load %arg2[%c0_1, %c0_2] : memref<64x192xbf16, #tpu.memory_space<vmem>>, vector<64x192xbf16>
    %c0_3 = arith.constant 0 : index
    %c0_4 = arith.constant 0 : index
    %2 = vector.load %arg3[%c0_3, %c0_4] : memref<64x64xbf16, #tpu.memory_space<vmem>>, vector<64x64xbf16>
    %c0_5 = arith.constant 0 : index
    %c0_6 = arith.constant 0 : index
    %3 = vector.load %arg4[%c0_5, %c0_6] : memref<1x64xf32, #tpu.memory_space<vmem>>, vector<1x64xf32>
    %cst = arith.constant dense<0.000000e+00> : vector<16x192xf32>
    %4 = tpu.matmul %0, %1, %cst {dimension_numbers = #tpu.dot_dimension_numbers<[1], [0], [0], [1], [0, 0, 1, 1], [], []>} : vector<16x64xbf16>, vector<64x192xbf16>, vector<16x192xf32> -> vector<16x192xf32>
    %5 = vector.extract_strided_slice %4 {offsets = [0, 0], sizes = [16, 64], strides = [1, 1]} : vector<16x192xf32> to vector<16x64xf32>
    %6 = arith.truncf %5 : vector<16x64xf32> to vector<16x64xbf16>
    %7 = vector.extract_strided_slice %4 {offsets = [0, 64], sizes = [16, 64], strides = [1, 1]} : vector<16x192xf32> to vector<16x64xf32>
    %8 = arith.truncf %7 : vector<16x64xf32> to vector<16x64xbf16>
    %9 = vector.extract_strided_slice %4 {offsets = [0, 128], sizes = [16, 64], strides = [1, 1]} : vector<16x192xf32> to vector<16x64xf32>
    %10 = arith.truncf %9 : vector<16x64xf32> to vector<16x64xbf16>
    %11 = tpu.iota {dimensions = array<i32: 0>} : vector<8x8xi32>
    %12 = tpu.iota {dimensions = array<i32: 1>} : vector<8x8xi32>
    %c4_i32 = arith.constant 4 : i32
    %13 = vector.broadcast %c4_i32 : i32 to vector<8x8xi32>
    %14 = arith.cmpi slt, %11, %13 : vector<8x8xi32>
    %c2_i32 = arith.constant 2 : i32
    %15 = vector.broadcast %c2_i32 : i32 to vector<8x8xi32>
    %16 = arith.muli %15, %11 : vector<8x8xi32>
    %c4_i32_7 = arith.constant 4 : i32
    %17 = vector.broadcast %c4_i32_7 : i32 to vector<8x8xi32>
    %18 = arith.subi %11, %17 : vector<8x8xi32>
    %c2_i32_8 = arith.constant 2 : i32
    %19 = vector.broadcast %c2_i32_8 : i32 to vector<8x8xi32>
    %20 = arith.muli %19, %18 : vector<8x8xi32>
    %c1_i32 = arith.constant 1 : i32
    %21 = vector.broadcast %c1_i32 : i32 to vector<8x8xi32>
    %22 = arith.addi %20, %21 : vector<8x8xi32>
    %23 = arith.select %14, %16, %22 : vector<8x8xi1>, vector<8x8xi32>
    %c4_i32_9 = arith.constant 4 : i32
    %24 = vector.broadcast %c4_i32_9 : i32 to vector<8x8xi32>
    %25 = arith.cmpi slt, %12, %24 : vector<8x8xi32>
    %c2_i32_10 = arith.constant 2 : i32
    %26 = vector.broadcast %c2_i32_10 : i32 to vector<8x8xi32>
    %27 = arith.muli %26, %12 : vector<8x8xi32>
    %c4_i32_11 = arith.constant 4 : i32
    %28 = vector.broadcast %c4_i32_11 : i32 to vector<8x8xi32>
    %29 = arith.subi %12, %28 : vector<8x8xi32>
    %c2_i32_12 = arith.constant 2 : i32
    %30 = vector.broadcast %c2_i32_12 : i32 to vector<8x8xi32>
    %31 = arith.muli %30, %29 : vector<8x8xi32>
    %c1_i32_13 = arith.constant 1 : i32
    %32 = vector.broadcast %c1_i32_13 : i32 to vector<8x8xi32>
    %33 = arith.addi %31, %32 : vector<8x8xi32>
    %34 = arith.select %25, %27, %33 : vector<8x8xi1>, vector<8x8xi32>
    %35 = arith.cmpi sge, %23, %34 : vector<8x8xi32>
    %36 = vector.shape_cast %3 : vector<1x64xf32> to vector<1x64xf32>
    %37 = vector.broadcast %36 : vector<1x64xf32> to vector<8x64xf32>
    %38 = vector.extract_strided_slice %6 {offsets = [0, 0], sizes = [8, 16], strides = [1, 1]} : vector<16x64xbf16> to vector<8x16xbf16>
    %39 = vector.extract_strided_slice %10 {offsets = [0, 0], sizes = [8, 16], strides = [1, 1]} : vector<16x64xbf16> to vector<8x16xbf16>
    %40 = vector.extract_strided_slice %8 {offsets = [0, 0], sizes = [8, 16], strides = [1, 1]} : vector<16x64xbf16> to vector<8x16xbf16>
    %41 = tpu.transpose %39, [1, 0] : vector<8x16xbf16> -> vector<16x8xbf16>
    %cst_14 = arith.constant dense<0.000000e+00> : vector<8x8xf32>
    %42 = tpu.matmul %38, %41, %cst_14 {dimension_numbers = #tpu.dot_dimension_numbers<[1], [0], [0], [1], [0, 0, 1, 1], [], []>} : vector<8x16xbf16>, vector<16x8xbf16>, vector<8x8xf32> -> vector<8x8xf32>
    %cst_15 = arith.constant -1.000000e+30 : f32
    %43 = vector.broadcast %cst_15 : f32 to vector<8x8xf32>
    %44 = arith.select %35, %42, %43 : vector<8x8xi1>, vector<8x8xf32>
    %cst_16 = arith.constant dense<0xFF800000> : vector<8xf32>
    %45 = vector.multi_reduction <maximumf>, %44, %cst_16 [1] : vector<8x8xf32> to vector<8xf32>
    %46 = vector.shape_cast %45 : vector<8xf32> to vector<8x1xf32>
    %47 = vector.broadcast %46 : vector<8x1xf32> to vector<8x8xf32>
    %48 = arith.subf %44, %47 : vector<8x8xf32>
    %49 = math.exp %48 : vector<8x8xf32>
    %cst_17 = arith.constant dense<0.000000e+00> : vector<8xf32>
    %50 = vector.multi_reduction <add>, %49, %cst_17 [1] : vector<8x8xf32> to vector<8xf32>
    %51 = vector.shape_cast %50 : vector<8xf32> to vector<8x1xf32>
    %52 = arith.truncf %49 : vector<8x8xf32> to vector<8x8xbf16>
    %cst_18 = arith.constant dense<0.000000e+00> : vector<8x16xf32>
    %53 = tpu.matmul %52, %40, %cst_18 {dimension_numbers = #tpu.dot_dimension_numbers<[1], [0], [0], [1], [0, 0, 1, 1], [], []>} : vector<8x8xbf16>, vector<8x16xbf16>, vector<8x16xf32> -> vector<8x16xf32>
    %54 = tpu.reciprocal %51 {approx = true} : vector<8x1xf32> -> vector<8x1xf32>
    %55 = vector.broadcast %54 : vector<8x1xf32> to vector<8x16xf32>
    %56 = arith.mulf %53, %55 : vector<8x16xf32>
    %57 = arith.truncf %56 : vector<8x16xf32> to vector<8x16xbf16>
    %58 = vector.extract_strided_slice %2 {offsets = [0, 0], sizes = [16, 64], strides = [1, 1]} : vector<64x64xbf16> to vector<16x64xbf16>
    %cst_19 = arith.constant dense<0.000000e+00> : vector<8x64xf32>
    %59 = tpu.matmul %57, %58, %cst_19 {dimension_numbers = #tpu.dot_dimension_numbers<[1], [0], [0], [1], [0, 0, 1, 1], [], []>} : vector<8x16xbf16>, vector<16x64xbf16>, vector<8x64xf32> -> vector<8x64xf32>
    %60 = arith.addf %37, %59 : vector<8x64xf32>
    %61 = vector.extract_strided_slice %6 {offsets = [0, 16], sizes = [8, 16], strides = [1, 1]} : vector<16x64xbf16> to vector<8x16xbf16>
    %62 = vector.extract_strided_slice %10 {offsets = [0, 16], sizes = [8, 16], strides = [1, 1]} : vector<16x64xbf16> to vector<8x16xbf16>
    %63 = vector.extract_strided_slice %8 {offsets = [0, 16], sizes = [8, 16], strides = [1, 1]} : vector<16x64xbf16> to vector<8x16xbf16>
    %64 = tpu.transpose %62, [1, 0] : vector<8x16xbf16> -> vector<16x8xbf16>
    %cst_20 = arith.constant dense<0.000000e+00> : vector<8x8xf32>
    %65 = tpu.matmul %61, %64, %cst_20 {dimension_numbers = #tpu.dot_dimension_numbers<[1], [0], [0], [1], [0, 0, 1, 1], [], []>} : vector<8x16xbf16>, vector<16x8xbf16>, vector<8x8xf32> -> vector<8x8xf32>
    %cst_21 = arith.constant -1.000000e+30 : f32
    %66 = vector.broadcast %cst_21 : f32 to vector<8x8xf32>
    %67 = arith.select %35, %65, %66 : vector<8x8xi1>, vector<8x8xf32>
    %cst_22 = arith.constant dense<0xFF800000> : vector<8xf32>
    %68 = vector.multi_reduction <maximumf>, %67, %cst_22 [1] : vector<8x8xf32> to vector<8xf32>
    %69 = vector.shape_cast %68 : vector<8xf32> to vector<8x1xf32>
    %70 = vector.broadcast %69 : vector<8x1xf32> to vector<8x8xf32>
    %71 = arith.subf %67, %70 : vector<8x8xf32>
    %72 = math.exp %71 : vector<8x8xf32>
    %cst_23 = arith.constant dense<0.000000e+00> : vector<8xf32>
    %73 = vector.multi_reduction <add>, %72, %cst_23 [1] : vector<8x8xf32> to vector<8xf32>
    %74 = vector.shape_cast %73 : vector<8xf32> to vector<8x1xf32>
    %75 = arith.truncf %72 : vector<8x8xf32> to vector<8x8xbf16>
    %cst_24 = arith.constant dense<0.000000e+00> : vector<8x16xf32>
    %76 = tpu.matmul %75, %63, %cst_24 {dimension_numbers = #tpu.dot_dimension_numbers<[1], [0], [0], [1], [0, 0, 1, 1], [], []>} : vector<8x8xbf16>, vector<8x16xbf16>, vector<8x16xf32> -> vector<8x16xf32>
    %77 = tpu.reciprocal %74 {approx = true} : vector<8x1xf32> -> vector<8x1xf32>
    %78 = vector.broadcast %77 : vector<8x1xf32> to vector<8x16xf32>
    %79 = arith.mulf %76, %78 : vector<8x16xf32>
    %80 = arith.truncf %79 : vector<8x16xf32> to vector<8x16xbf16>
    %81 = vector.extract_strided_slice %2 {offsets = [16, 0], sizes = [16, 64], strides = [1, 1]} : vector<64x64xbf16> to vector<16x64xbf16>
    %cst_25 = arith.constant dense<0.000000e+00> : vector<8x64xf32>
    %82 = tpu.matmul %80, %81, %cst_25 {dimension_numbers = #tpu.dot_dimension_numbers<[1], [0], [0], [1], [0, 0, 1, 1], [], []>} : vector<8x16xbf16>, vector<16x64xbf16>, vector<8x64xf32> -> vector<8x64xf32>
    %83 = arith.addf %60, %82 : vector<8x64xf32>
    %84 = vector.extract_strided_slice %6 {offsets = [0, 32], sizes = [8, 16], strides = [1, 1]} : vector<16x64xbf16> to vector<8x16xbf16>
    %85 = vector.extract_strided_slice %10 {offsets = [0, 32], sizes = [8, 16], strides = [1, 1]} : vector<16x64xbf16> to vector<8x16xbf16>
    %86 = vector.extract_strided_slice %8 {offsets = [0, 32], sizes = [8, 16], strides = [1, 1]} : vector<16x64xbf16> to vector<8x16xbf16>
    %87 = tpu.transpose %85, [1, 0] : vector<8x16xbf16> -> vector<16x8xbf16>
    %cst_26 = arith.constant dense<0.000000e+00> : vector<8x8xf32>
    %88 = tpu.matmul %84, %87, %cst_26 {dimension_numbers = #tpu.dot_dimension_numbers<[1], [0], [0], [1], [0, 0, 1, 1], [], []>} : vector<8x16xbf16>, vector<16x8xbf16>, vector<8x8xf32> -> vector<8x8xf32>
    %cst_27 = arith.constant -1.000000e+30 : f32
    %89 = vector.broadcast %cst_27 : f32 to vector<8x8xf32>
    %90 = arith.select %35, %88, %89 : vector<8x8xi1>, vector<8x8xf32>
    %cst_28 = arith.constant dense<0xFF800000> : vector<8xf32>
    %91 = vector.multi_reduction <maximumf>, %90, %cst_28 [1] : vector<8x8xf32> to vector<8xf32>
    %92 = vector.shape_cast %91 : vector<8xf32> to vector<8x1xf32>
    %93 = vector.broadcast %92 : vector<8x1xf32> to vector<8x8xf32>
    %94 = arith.subf %90, %93 : vector<8x8xf32>
    %95 = math.exp %94 : vector<8x8xf32>
    %cst_29 = arith.constant dense<0.000000e+00> : vector<8xf32>
    %96 = vector.multi_reduction <add>, %95, %cst_29 [1] : vector<8x8xf32> to vector<8xf32>
    %97 = vector.shape_cast %96 : vector<8xf32> to vector<8x1xf32>
    %98 = arith.truncf %95 : vector<8x8xf32> to vector<8x8xbf16>
    %cst_30 = arith.constant dense<0.000000e+00> : vector<8x16xf32>
    %99 = tpu.matmul %98, %86, %cst_30 {dimension_numbers = #tpu.dot_dimension_numbers<[1], [0], [0], [1], [0, 0, 1, 1], [], []>} : vector<8x8xbf16>, vector<8x16xbf16>, vector<8x16xf32> -> vector<8x16xf32>
    %100 = tpu.reciprocal %97 {approx = true} : vector<8x1xf32> -> vector<8x1xf32>
    %101 = vector.broadcast %100 : vector<8x1xf32> to vector<8x16xf32>
    %102 = arith.mulf %99, %101 : vector<8x16xf32>
    %103 = arith.truncf %102 : vector<8x16xf32> to vector<8x16xbf16>
    %104 = vector.extract_strided_slice %2 {offsets = [32, 0], sizes = [16, 64], strides = [1, 1]} : vector<64x64xbf16> to vector<16x64xbf16>
    %cst_31 = arith.constant dense<0.000000e+00> : vector<8x64xf32>
    %105 = tpu.matmul %103, %104, %cst_31 {dimension_numbers = #tpu.dot_dimension_numbers<[1], [0], [0], [1], [0, 0, 1, 1], [], []>} : vector<8x16xbf16>, vector<16x64xbf16>, vector<8x64xf32> -> vector<8x64xf32>
    %106 = arith.addf %83, %105 : vector<8x64xf32>
    %107 = vector.extract_strided_slice %6 {offsets = [0, 48], sizes = [8, 16], strides = [1, 1]} : vector<16x64xbf16> to vector<8x16xbf16>
    %108 = vector.extract_strided_slice %10 {offsets = [0, 48], sizes = [8, 16], strides = [1, 1]} : vector<16x64xbf16> to vector<8x16xbf16>
    %109 = vector.extract_strided_slice %8 {offsets = [0, 48], sizes = [8, 16], strides = [1, 1]} : vector<16x64xbf16> to vector<8x16xbf16>
    %110 = tpu.transpose %108, [1, 0] : vector<8x16xbf16> -> vector<16x8xbf16>
    %cst_32 = arith.constant dense<0.000000e+00> : vector<8x8xf32>
    %111 = tpu.matmul %107, %110, %cst_32 {dimension_numbers = #tpu.dot_dimension_numbers<[1], [0], [0], [1], [0, 0, 1, 1], [], []>} : vector<8x16xbf16>, vector<16x8xbf16>, vector<8x8xf32> -> vector<8x8xf32>
    %cst_33 = arith.constant -1.000000e+30 : f32
    %112 = vector.broadcast %cst_33 : f32 to vector<8x8xf32>
    %113 = arith.select %35, %111, %112 : vector<8x8xi1>, vector<8x8xf32>
    %cst_34 = arith.constant dense<0xFF800000> : vector<8xf32>
    %114 = vector.multi_reduction <maximumf>, %113, %cst_34 [1] : vector<8x8xf32> to vector<8xf32>
    %115 = vector.shape_cast %114 : vector<8xf32> to vector<8x1xf32>
    %116 = vector.broadcast %115 : vector<8x1xf32> to vector<8x8xf32>
    %117 = arith.subf %113, %116 : vector<8x8xf32>
    %118 = math.exp %117 : vector<8x8xf32>
    %cst_35 = arith.constant dense<0.000000e+00> : vector<8xf32>
    %119 = vector.multi_reduction <add>, %118, %cst_35 [1] : vector<8x8xf32> to vector<8xf32>
    %120 = vector.shape_cast %119 : vector<8xf32> to vector<8x1xf32>
    %121 = arith.truncf %118 : vector<8x8xf32> to vector<8x8xbf16>
    %cst_36 = arith.constant dense<0.000000e+00> : vector<8x16xf32>
    %122 = tpu.matmul %121, %109, %cst_36 {dimension_numbers = #tpu.dot_dimension_numbers<[1], [0], [0], [1], [0, 0, 1, 1], [], []>} : vector<8x8xbf16>, vector<8x16xbf16>, vector<8x16xf32> -> vector<8x16xf32>
    %123 = tpu.reciprocal %120 {approx = true} : vector<8x1xf32> -> vector<8x1xf32>
    %124 = vector.broadcast %123 : vector<8x1xf32> to vector<8x16xf32>
    %125 = arith.mulf %122, %124 : vector<8x16xf32>
    %126 = arith.truncf %125 : vector<8x16xf32> to vector<8x16xbf16>
    %127 = vector.extract_strided_slice %2 {offsets = [48, 0], sizes = [16, 64], strides = [1, 1]} : vector<64x64xbf16> to vector<16x64xbf16>
    %cst_37 = arith.constant dense<0.000000e+00> : vector<8x64xf32>
    %128 = tpu.matmul %126, %127, %cst_37 {dimension_numbers = #tpu.dot_dimension_numbers<[1], [0], [0], [1], [0, 0, 1, 1], [], []>} : vector<8x16xbf16>, vector<16x64xbf16>, vector<8x64xf32> -> vector<8x64xf32>
    %129 = arith.addf %106, %128 : vector<8x64xf32>
    %130 = vector.extract_strided_slice %129 {offsets = [0, 0], sizes = [4, 64], strides = [1, 1]} : vector<8x64xf32> to vector<4x64xf32>
    %131 = vector.extract_strided_slice %129 {offsets = [4, 0], sizes = [4, 64], strides = [1, 1]} : vector<8x64xf32> to vector<4x64xf32>
    %132 = tpu.concatenate %130, %131 in 1 : vector<4x64xf32>, vector<4x64xf32> -> vector<4x128xf32>
    %133 = vector.extract_strided_slice %6 {offsets = [8, 0], sizes = [8, 16], strides = [1, 1]} : vector<16x64xbf16> to vector<8x16xbf16>
    %134 = vector.extract_strided_slice %10 {offsets = [8, 0], sizes = [8, 16], strides = [1, 1]} : vector<16x64xbf16> to vector<8x16xbf16>
    %135 = vector.extract_strided_slice %8 {offsets = [8, 0], sizes = [8, 16], strides = [1, 1]} : vector<16x64xbf16> to vector<8x16xbf16>
    %136 = tpu.transpose %134, [1, 0] : vector<8x16xbf16> -> vector<16x8xbf16>
    %cst_38 = arith.constant dense<0.000000e+00> : vector<8x8xf32>
    %137 = tpu.matmul %133, %136, %cst_38 {dimension_numbers = #tpu.dot_dimension_numbers<[1], [0], [0], [1], [0, 0, 1, 1], [], []>} : vector<8x16xbf16>, vector<16x8xbf16>, vector<8x8xf32> -> vector<8x8xf32>
    %cst_39 = arith.constant -1.000000e+30 : f32
    %138 = vector.broadcast %cst_39 : f32 to vector<8x8xf32>
    %139 = arith.select %35, %137, %138 : vector<8x8xi1>, vector<8x8xf32>
    %cst_40 = arith.constant dense<0xFF800000> : vector<8xf32>
    %140 = vector.multi_reduction <maximumf>, %139, %cst_40 [1] : vector<8x8xf32> to vector<8xf32>
    %141 = vector.shape_cast %140 : vector<8xf32> to vector<8x1xf32>
    %142 = vector.broadcast %141 : vector<8x1xf32> to vector<8x8xf32>
    %143 = arith.subf %139, %142 : vector<8x8xf32>
    %144 = math.exp %143 : vector<8x8xf32>
    %cst_41 = arith.constant dense<0.000000e+00> : vector<8xf32>
    %145 = vector.multi_reduction <add>, %144, %cst_41 [1] : vector<8x8xf32> to vector<8xf32>
    %146 = vector.shape_cast %145 : vector<8xf32> to vector<8x1xf32>
    %147 = arith.truncf %144 : vector<8x8xf32> to vector<8x8xbf16>
    %cst_42 = arith.constant dense<0.000000e+00> : vector<8x16xf32>
    %148 = tpu.matmul %147, %135, %cst_42 {dimension_numbers = #tpu.dot_dimension_numbers<[1], [0], [0], [1], [0, 0, 1, 1], [], []>} : vector<8x8xbf16>, vector<8x16xbf16>, vector<8x16xf32> -> vector<8x16xf32>
    %149 = tpu.reciprocal %146 {approx = true} : vector<8x1xf32> -> vector<8x1xf32>
    %150 = vector.broadcast %149 : vector<8x1xf32> to vector<8x16xf32>
    %151 = arith.mulf %148, %150 : vector<8x16xf32>
    %152 = arith.truncf %151 : vector<8x16xf32> to vector<8x16xbf16>
    %153 = vector.extract_strided_slice %2 {offsets = [0, 0], sizes = [16, 64], strides = [1, 1]} : vector<64x64xbf16> to vector<16x64xbf16>
    %cst_43 = arith.constant dense<0.000000e+00> : vector<8x64xf32>
    %154 = tpu.matmul %152, %153, %cst_43 {dimension_numbers = #tpu.dot_dimension_numbers<[1], [0], [0], [1], [0, 0, 1, 1], [], []>} : vector<8x16xbf16>, vector<16x64xbf16>, vector<8x64xf32> -> vector<8x64xf32>
    %155 = arith.addf %37, %154 : vector<8x64xf32>
    %156 = vector.extract_strided_slice %6 {offsets = [8, 16], sizes = [8, 16], strides = [1, 1]} : vector<16x64xbf16> to vector<8x16xbf16>
    %157 = vector.extract_strided_slice %10 {offsets = [8, 16], sizes = [8, 16], strides = [1, 1]} : vector<16x64xbf16> to vector<8x16xbf16>
    %158 = vector.extract_strided_slice %8 {offsets = [8, 16], sizes = [8, 16], strides = [1, 1]} : vector<16x64xbf16> to vector<8x16xbf16>
    %159 = tpu.transpose %157, [1, 0] : vector<8x16xbf16> -> vector<16x8xbf16>
    %cst_44 = arith.constant dense<0.000000e+00> : vector<8x8xf32>
    %160 = tpu.matmul %156, %159, %cst_44 {dimension_numbers = #tpu.dot_dimension_numbers<[1], [0], [0], [1], [0, 0, 1, 1], [], []>} : vector<8x16xbf16>, vector<16x8xbf16>, vector<8x8xf32> -> vector<8x8xf32>
    %cst_45 = arith.constant -1.000000e+30 : f32
    %161 = vector.broadcast %cst_45 : f32 to vector<8x8xf32>
    %162 = arith.select %35, %160, %161 : vector<8x8xi1>, vector<8x8xf32>
    %cst_46 = arith.constant dense<0xFF800000> : vector<8xf32>
    %163 = vector.multi_reduction <maximumf>, %162, %cst_46 [1] : vector<8x8xf32> to vector<8xf32>
    %164 = vector.shape_cast %163 : vector<8xf32> to vector<8x1xf32>
    %165 = vector.broadcast %164 : vector<8x1xf32> to vector<8x8xf32>
    %166 = arith.subf %162, %165 : vector<8x8xf32>
    %167 = math.exp %166 : vector<8x8xf32>
    %cst_47 = arith.constant dense<0.000000e+00> : vector<8xf32>
    %168 = vector.multi_reduction <add>, %167, %cst_47 [1] : vector<8x8xf32> to vector<8xf32>
    %169 = vector.shape_cast %168 : vector<8xf32> to vector<8x1xf32>
    %170 = arith.truncf %167 : vector<8x8xf32> to vector<8x8xbf16>
    %cst_48 = arith.constant dense<0.000000e+00> : vector<8x16xf32>
    %171 = tpu.matmul %170, %158, %cst_48 {dimension_numbers = #tpu.dot_dimension_numbers<[1], [0], [0], [1], [0, 0, 1, 1], [], []>} : vector<8x8xbf16>, vector<8x16xbf16>, vector<8x16xf32> -> vector<8x16xf32>
    %172 = tpu.reciprocal %169 {approx = true} : vector<8x1xf32> -> vector<8x1xf32>
    %173 = vector.broadcast %172 : vector<8x1xf32> to vector<8x16xf32>
    %174 = arith.mulf %171, %173 : vector<8x16xf32>
    %175 = arith.truncf %174 : vector<8x16xf32> to vector<8x16xbf16>
    %176 = vector.extract_strided_slice %2 {offsets = [16, 0], sizes = [16, 64], strides = [1, 1]} : vector<64x64xbf16> to vector<16x64xbf16>
    %cst_49 = arith.constant dense<0.000000e+00> : vector<8x64xf32>
    %177 = tpu.matmul %175, %176, %cst_49 {dimension_numbers = #tpu.dot_dimension_numbers<[1], [0], [0], [1], [0, 0, 1, 1], [], []>} : vector<8x16xbf16>, vector<16x64xbf16>, vector<8x64xf32> -> vector<8x64xf32>
    %178 = arith.addf %155, %177 : vector<8x64xf32>
    %179 = vector.extract_strided_slice %6 {offsets = [8, 32], sizes = [8, 16], strides = [1, 1]} : vector<16x64xbf16> to vector<8x16xbf16>
    %180 = vector.extract_strided_slice %10 {offsets = [8, 32], sizes = [8, 16], strides = [1, 1]} : vector<16x64xbf16> to vector<8x16xbf16>
    %181 = vector.extract_strided_slice %8 {offsets = [8, 32], sizes = [8, 16], strides = [1, 1]} : vector<16x64xbf16> to vector<8x16xbf16>
    %182 = tpu.transpose %180, [1, 0] : vector<8x16xbf16> -> vector<16x8xbf16>
    %cst_50 = arith.constant dense<0.000000e+00> : vector<8x8xf32>
    %183 = tpu.matmul %179, %182, %cst_50 {dimension_numbers = #tpu.dot_dimension_numbers<[1], [0], [0], [1], [0, 0, 1, 1], [], []>} : vector<8x16xbf16>, vector<16x8xbf16>, vector<8x8xf32> -> vector<8x8xf32>
    %cst_51 = arith.constant -1.000000e+30 : f32
    %184 = vector.broadcast %cst_51 : f32 to vector<8x8xf32>
    %185 = arith.select %35, %183, %184 : vector<8x8xi1>, vector<8x8xf32>
    %cst_52 = arith.constant dense<0xFF800000> : vector<8xf32>
    %186 = vector.multi_reduction <maximumf>, %185, %cst_52 [1] : vector<8x8xf32> to vector<8xf32>
    %187 = vector.shape_cast %186 : vector<8xf32> to vector<8x1xf32>
    %188 = vector.broadcast %187 : vector<8x1xf32> to vector<8x8xf32>
    %189 = arith.subf %185, %188 : vector<8x8xf32>
    %190 = math.exp %189 : vector<8x8xf32>
    %cst_53 = arith.constant dense<0.000000e+00> : vector<8xf32>
    %191 = vector.multi_reduction <add>, %190, %cst_53 [1] : vector<8x8xf32> to vector<8xf32>
    %192 = vector.shape_cast %191 : vector<8xf32> to vector<8x1xf32>
    %193 = arith.truncf %190 : vector<8x8xf32> to vector<8x8xbf16>
    %cst_54 = arith.constant dense<0.000000e+00> : vector<8x16xf32>
    %194 = tpu.matmul %193, %181, %cst_54 {dimension_numbers = #tpu.dot_dimension_numbers<[1], [0], [0], [1], [0, 0, 1, 1], [], []>} : vector<8x8xbf16>, vector<8x16xbf16>, vector<8x16xf32> -> vector<8x16xf32>
    %195 = tpu.reciprocal %192 {approx = true} : vector<8x1xf32> -> vector<8x1xf32>
    %196 = vector.broadcast %195 : vector<8x1xf32> to vector<8x16xf32>
    %197 = arith.mulf %194, %196 : vector<8x16xf32>
    %198 = arith.truncf %197 : vector<8x16xf32> to vector<8x16xbf16>
    %199 = vector.extract_strided_slice %2 {offsets = [32, 0], sizes = [16, 64], strides = [1, 1]} : vector<64x64xbf16> to vector<16x64xbf16>
    %cst_55 = arith.constant dense<0.000000e+00> : vector<8x64xf32>
    %200 = tpu.matmul %198, %199, %cst_55 {dimension_numbers = #tpu.dot_dimension_numbers<[1], [0], [0], [1], [0, 0, 1, 1], [], []>} : vector<8x16xbf16>, vector<16x64xbf16>, vector<8x64xf32> -> vector<8x64xf32>
    %201 = arith.addf %178, %200 : vector<8x64xf32>
    %202 = vector.extract_strided_slice %6 {offsets = [8, 48], sizes = [8, 16], strides = [1, 1]} : vector<16x64xbf16> to vector<8x16xbf16>
    %203 = vector.extract_strided_slice %10 {offsets = [8, 48], sizes = [8, 16], strides = [1, 1]} : vector<16x64xbf16> to vector<8x16xbf16>
    %204 = vector.extract_strided_slice %8 {offsets = [8, 48], sizes = [8, 16], strides = [1, 1]} : vector<16x64xbf16> to vector<8x16xbf16>
    %205 = tpu.transpose %203, [1, 0] : vector<8x16xbf16> -> vector<16x8xbf16>
    %cst_56 = arith.constant dense<0.000000e+00> : vector<8x8xf32>
    %206 = tpu.matmul %202, %205, %cst_56 {dimension_numbers = #tpu.dot_dimension_numbers<[1], [0], [0], [1], [0, 0, 1, 1], [], []>} : vector<8x16xbf16>, vector<16x8xbf16>, vector<8x8xf32> -> vector<8x8xf32>
    %cst_57 = arith.constant -1.000000e+30 : f32
    %207 = vector.broadcast %cst_57 : f32 to vector<8x8xf32>
    %208 = arith.select %35, %206, %207 : vector<8x8xi1>, vector<8x8xf32>
    %cst_58 = arith.constant dense<0xFF800000> : vector<8xf32>
    %209 = vector.multi_reduction <maximumf>, %208, %cst_58 [1] : vector<8x8xf32> to vector<8xf32>
    %210 = vector.shape_cast %209 : vector<8xf32> to vector<8x1xf32>
    %211 = vector.broadcast %210 : vector<8x1xf32> to vector<8x8xf32>
    %212 = arith.subf %208, %211 : vector<8x8xf32>
    %213 = math.exp %212 : vector<8x8xf32>
    %cst_59 = arith.constant dense<0.000000e+00> : vector<8xf32>
    %214 = vector.multi_reduction <add>, %213, %cst_59 [1] : vector<8x8xf32> to vector<8xf32>
    %215 = vector.shape_cast %214 : vector<8xf32> to vector<8x1xf32>
    %216 = arith.truncf %213 : vector<8x8xf32> to vector<8x8xbf16>
    %cst_60 = arith.constant dense<0.000000e+00> : vector<8x16xf32>
    %217 = tpu.matmul %216, %204, %cst_60 {dimension_numbers = #tpu.dot_dimension_numbers<[1], [0], [0], [1], [0, 0, 1, 1], [], []>} : vector<8x8xbf16>, vector<8x16xbf16>, vector<8x16xf32> -> vector<8x16xf32>
    %218 = tpu.reciprocal %215 {approx = true} : vector<8x1xf32> -> vector<8x1xf32>
    %219 = vector.broadcast %218 : vector<8x1xf32> to vector<8x16xf32>
    %220 = arith.mulf %217, %219 : vector<8x16xf32>
    %221 = arith.truncf %220 : vector<8x16xf32> to vector<8x16xbf16>
    %222 = vector.extract_strided_slice %2 {offsets = [48, 0], sizes = [16, 64], strides = [1, 1]} : vector<64x64xbf16> to vector<16x64xbf16>
    %cst_61 = arith.constant dense<0.000000e+00> : vector<8x64xf32>
    %223 = tpu.matmul %221, %222, %cst_61 {dimension_numbers = #tpu.dot_dimension_numbers<[1], [0], [0], [1], [0, 0, 1, 1], [], []>} : vector<8x16xbf16>, vector<16x64xbf16>, vector<8x64xf32> -> vector<8x64xf32>
    %224 = arith.addf %201, %223 : vector<8x64xf32>
    %225 = vector.extract_strided_slice %224 {offsets = [0, 0], sizes = [4, 64], strides = [1, 1]} : vector<8x64xf32> to vector<4x64xf32>
    %226 = vector.extract_strided_slice %224 {offsets = [4, 0], sizes = [4, 64], strides = [1, 1]} : vector<8x64xf32> to vector<4x64xf32>
    %227 = tpu.concatenate %225, %226 in 1 : vector<4x64xf32>, vector<4x64xf32> -> vector<4x128xf32>
    %228 = tpu.concatenate %132, %227 in 0 : vector<4x128xf32>, vector<4x128xf32> -> vector<8x128xf32>
    %c0_62 = arith.constant 0 : index
    %c0_63 = arith.constant 0 : index
    %229 = vector.load %arg5[%c0_62, %c0_63] : memref<8x128xf32, #tpu.memory_space<vmem>>, vector<8x128xf32>
    tpu.vector_store %arg5[%c0_62, %c0_63], %228 {strides = array<i32>} : memref<8x128xf32, #tpu.memory_space<vmem>>, vector<8x128xf32>,
    return
  }
  func.func @transform_0(%arg0: i32) -> (i32, i32) {
    %c0_i32 = arith.constant 0 : i32
    %c0_i32_0 = arith.constant 0 : i32
    return %arg0, %c0_i32 : i32, i32
  }
  func.func @transform_1(%arg0: i32) -> (i32, i32) {
    %c0_i32 = arith.constant 0 : i32
    %c0_i32_0 = arith.constant 0 : i32
    %c0_i32_1 = arith.constant 0 : i32
    return %c0_i32, %c0_i32_0 : i32, i32
  }
  func.func @transform_2(%arg0: i32) -> (i32, i32) {
    %c0_i32 = arith.constant 0 : i32
    %c0_i32_0 = arith.constant 0 : i32
    %c0_i32_1 = arith.constant 0 : i32
    return %c0_i32, %c0_i32_0 : i32, i32
  }
  func.func @transform_3(%arg0: i32) -> (i32, i32) {
    %c0_i32 = arith.constant 0 : i32
    %c0_i32_0 = arith.constant 0 : i32
    %c0_i32_1 = arith.constant 0 : i32
    return %c0_i32, %c0_i32_0 : i32, i32
  }
  func.func @transform_4(%arg0: i32) -> (i32, i32) {
    %c0_i32 = arith.constant 0 : i32
    %c0_i32_0 = arith.constant 0 : i32
    return %arg0, %c0_i32 : i32, i32
  }
}

</mosaic_0001>

<bundles_post_ra>
// kernel: tpu_custom_call.1
= control target key start
LH: loop header
LB: loop body
LE: loop exit
PB: predicated region body
PF: predicated region fallthrough
CT: control target
= control target key end

     0   :  { %9 = vsyncpa [#allocation3], 0  ;;  %s1305_s0 = inlined_call_operand.hbm [shape: bf16[16,64], index: 0, kind: input, shape index: {}]   ;;  %s1306_s1 = inlined_call_operand.hbm [shape: bf16[64,192], index: 1, kind: input, shape index: {}]   ;;  %s1307_s2 = inlined_call_operand.hbm [shape: bf16[64,64], index: 2, kind: input, shape index: {}]   ;;  %s1308_s3 = inlined_call_operand.vmem [shape: f32[1,64], index: 3, kind: input, shape index: {}]   ;;  %s1309_s4 = inlined_call_operand.hbm [shape: f32[8,128], index: 4, kind: output, shape index: {}]  }
   0x1   :  { %10 = vsyncpa [#allocation6], 0  ;;  %s29_s17 = sshll.u32 %s1306_s1, 4  ;;  %s30_s17 = int_to_ptr.hbm [resolvable:$true] %s29_s17 }
   0x2   :  { %11 = vsyncpa [#allocation4], 0  ;;  %s1094_s18 = smov [#allocation5]   ;;  %s16_s22 = sshll.u32 %s1305_s0, 4  ;;  %s17_s22 = int_to_ptr.hbm [resolvable:$true] %s16_s22 }
   0x3   :  { %s31_s19 = sshll.u32 %s1094_s18, 4  ;;  %s1095_s23 = smov 128   ;;  %s32_s19 = int_to_ptr.vmem [resolvable:$true] %s31_s19 }
   0x4   :  { %s1096_s24 = smov 8   ;;  %s1097_s25 = smov [#allocation2]  }
   0x5   :  { %37 = dma.hbm_to_vmem [thread:$0]  %s30_s17, 1024, %s32_s19, [#allocation6], %s1095_s23, %s1095_s23, %s1096_s24  }
   0x6   :  { %s18_s26 = sshll.u32 %s1097_s25, 4  ;;  %s1098_s27 = smov 64   ;;  %s19_s26 = int_to_ptr.vmem [resolvable:$true] %s18_s26 }
   0x7   :  { %s1099_s28 = smov 4   ;;  %s42_s30 = sshll.u32 %s1307_s2, 4  ;;  %s43_s30 = int_to_ptr.hbm [resolvable:$true] %s42_s30 }
   0x8   :  { %24 = dma.hbm_to_vmem [thread:$0]  %s17_s22, 128, %s19_s26, [#allocation3], %s1098_s27, %s1098_s27, %s1099_s28  }
   0x9   :  { %s1100_s5 = smov [#allocation7]  }
   0xa   :  { %s44_s6 = sshll.u32 %s1100_s5, 4  ;;  %s45_s6 = int_to_ptr.vmem [resolvable:$true] %s44_s6 }
   0xb   :  { %50 = dma.hbm_to_vmem [thread:$0]  %s43_s30, 512, %s45_s6, [#allocation6], %s1098_s27, %s1098_s27, %s1099_s28  }
   0xc   :  { %1088 = dma.done.wait [#allocation3], 128  }
   0xd   :  { %1089 = vsyncadd [#allocation3], 4294967168 }
   0xe   :  { %1090 = dma.done.wait [#allocation6], 1536  }
   0xf   :  { %1091 = vsyncadd [#allocation6], 4294965760  ;;  %v882_v0 = vld [vmem:[#allocation5 + $0x30] sm:$0xf]  ;;  %v940_v1 = vld [vmem:[#allocation5 + $0x34] sm:$0xf0]  ;;  %v166_v38 = vlaneseq }
  0x10   :  { %v939_v2 = vld [vmem:[#allocation5 + $0x34] sm:$0xf]  ;;  %v883_v3 = vor.u32 %v940_v1, %v882_v0  ;;  %v884_v4 = vld [vmem:[#allocation5 + $0x38] sm:$0xf0]  ;;  %v874_v5 = vld [vmem:[#allocation5 + $0x20] sm:$0xf] }
  0x11   :  { %v938_v6 = vld [vmem:[#allocation5 + $0x24] sm:$0xf0]  ;;  %v887_v7 = vor.u32 %v939_v2, %v884_v4  ;;  %v937_v8 = vld [vmem:[#allocation5 + $0x24] sm:$0xf]  ;;  %v876_v9 = vld [vmem:[#allocation5 + $0x28] sm:$0xf0] }
  0x12   :  { %138 = vmatpush.bf16.msra.mxu0 %v883_v3  ;;  %v875_v10 = vor.u32 %v938_v6, %v874_v5  ;;  %v879_v11 = vor.u32 %v937_v8, %v876_v9  ;;  %v866_v12 = vld [vmem:[#allocation5 + $0x10] sm:$0xf]  ;;  %v936_v13 = vld [vmem:[#allocation5 + $0x14] sm:$0xf0]  ;;  %v935_v14 = vld [vmem:[#allocation5 + $0x14] sm:$0xf] }
  0x13   :  { %152 = vmatpush.bf16.msra.mxu1 %v887_v7  ;;  %v868_v15 = vld [vmem:[#allocation5 + $0x18] sm:$0xf0]  ;;  %v867_v16 = vor.u32 %v936_v13, %v866_v12  ;;  %v858_v18 = vld [vmem:[#allocation5] sm:$0xf]  ;;  %v934_v19 = vld [vmem:[#allocation5 + $0x4] sm:$0xf0] }
  0x14   :  { %v871_v17 = vor.u32 %v935_v14, %v868_v15  ;;  %v933_v20 = vld [vmem:[#allocation5 + $0x4] sm:$0xf]  ;;  %v860_v21 = vld [vmem:[#allocation5 + $0x8] sm:$0xf0]  ;;  %v859_v22 = vor.u32 %v934_v19, %v858_v18  ;;  %v932_v24 = vld [vmem:[#allocation2] sm:$0xff]  ;;  %vm130_vm0 = vcmask 523264  }
  0x15   :  { %v863_v23 = vor.u32 %v933_v20, %v860_v21  ;;  %vm186_vm1 = vcmask 130048   ;;  %s1101_s0 = smov 112   ;;  %s1102_s2 = smov 48   ;;  %vm226_vm2 = vcmask 1043456   ;;  %v167_v40 = vshrl.u32 %v166_v38, 7  ;;  %v941_v59 = vld [vmem:[#allocation7] sm:$0xff] }
  0x16   :  { %139 = vmatpush.bf16.msra.mxu0 %v875_v10  ;;  %s1103_s7 = smov 96   ;;  %s1104_s8 = smov 80   ;;  %v169_v41 = vand.u32 127, %v166_v38  ;;  %vm207_vm6 = vcmask 64512   ;;  %v1189_v8 = vld [vmem:[#allocation7 + $0x10] sm:$0xff] }
  0x17   :  { %153 = vmatpush.bf16.msra.mxu1 %v879_v11  ;;  %v890_v43 = vadd.s32 4294967292, %v167_v40  ;;  %v171_v48 = vmul.u32 2, %v167_v40  ;;  %vm170_vm3 = vcmp.lt.s32.totalorder %v167_v40, 4  ;;  %s1105_s9 = smov 16   ;;  %s1106_s10 = smov 32  }
  0x18   :  { %v891_v44 = vadd.s32 4294967292, %v169_v41  ;;  %v177_v50 = vmul.u32 2, %v169_v41  ;;  %vm176_vm4 = vcmp.lt.s32.totalorder %v169_v41, 4  ;;  %s841_s16 = sshll.u32 %s1309_s4, 4  ;;  %s842_s16 = int_to_ptr.hbm [resolvable:$true] %s841_s16 }
  0x19   :  { %v173_v46 = vmul.u32 2, %v890_v43 }
  0x1a   :  { %140 = vmatpush.bf16.msra.mxu0 %v867_v16  ;;  %v179_v47 = vmul.u32 2, %v891_v44 }
  0x1b   :  { %154 = vmatpush.bf16.msra.mxu1 %v871_v17  ;;  %v174_v49 = vadd.s32 1, %v173_v46 }
  0x1c   :  { %v180_v51 = vadd.s32 1, %v179_v47 }
  0x1d   :  { %v175_v52 = vsel %vm170_vm3, %v171_v48, %v174_v49  ;;  %v1220_v49 = vld [vmem:[%s1308_s3] ss:$0 sm:$0xff]  ;;  %s1107_s3 = smov [#allocation8]  }
  0x1e   :  { %141 = vmatpush.bf16.msra.mxu0 %v859_v22  ;;  %v181_v53 = vsel %vm176_vm4, %v177_v50, %v180_v51  ;;  %s839_s13 = sshll.u32 %s1107_s3, 4  ;;  %s840_s13 = int_to_ptr.vmem [resolvable:$true] %s839_s13 }
  0x1f   :  { %155 = vmatpush.bf16.msra.mxu1 %v863_v23  ;;  %vm1172_vm5 = vcmp.ge.s32.totalorder %v175_v52, %v181_v53 }
  0x21   :  { %888 = vmatmul.msk.bf16.vlgmr.msra.gmra.mxu0 %vm130_vm0, %v932_v24 }
  0x22   :  { %889 = vmatmul.msk.bf16.vlgmr.msra.gmra.mxu1 %vm130_vm0, %v932_v24 }
  0x9e   :  { %v143_v25 = vpop.f32.mrf.mxu0 }
  0x9f   :  { %v162_v26 = vpack.c.bf16 %v143_v25, %v143_v25  ;;  %v157_v27 = vpop.f32.mrf.mxu1 }
  0xa0   :  { %v164_v28 = vpack.c.bf16 %v157_v27, %v157_v27 }
  0xa1   :  { %v219_v29 = vunpack.c.l.b16 %v162_v26 }
  0xa2   :  { %v272_v30 = vunpack.c.l.b16 %v164_v28  ;;  %v191_v31 = vsel %vm186_vm1, %v164_v28, 0 }
  0xa3   :  { %v1149_v32 = vpack.c.b16 %v219_v29, %v219_v29  ;;  %200 = vmatpush.bf16.xpose.msra.mxu2 %v191_v31  ;;  %v1204_v29 = vld [vmem:[#allocation7 + $0x8] sm:$0xff] }
  0xa4   :  { %v1151_v33 = vpack.c.b16 %v272_v30, %v272_v30  ;;  %346 = vmatpush.bf16.msrb.mxu1 %v1204_v29 }
  0xa5   :  { %221 = vrot.lane.b32.xlu2 %v1149_v32, %s1098_s27 }
  0xa6   :  { %274 = vrot.lane.b32.xlu0 %v1151_v33, %s1101_s0  ;;  %v145_v31 = vpop.f32.mrf.mxu0 }
  0xa7   :  { %v159_v12 = vpop.f32.mrf.mxu1  ;;  %v163_v46 = vpack.c.bf16 %v145_v31, %v145_v31 }
  0xa8   :  { %v1192_v13 = vpack.c.bf16 %v159_v12, %v159_v12 }
  0xa9   :  { %v552_v47 = vunpack.c.l.b16 %v163_v46 }
  0xaa   :  { %892 = vmatmul.msk.bf16.vlgmr.msra.gmra.mxu2 %vm186_vm1, %v162_v26  ;;  %v525_v17 = vsel %vm186_vm1, %v1192_v13, 0 }
  0xab   :  { %v1213_v48 = vpack.c.b16 %v552_v47, %v552_v47 }
  0xad   :  { %306 = vrot.lane.b32.xlu2 %v1149_v32, %s1102_s2 }
  0xae   :  { %269 = vrot.lane.b32.xlu0 %v1149_v32, %s1101_s0 }
  0xb5   :  { %355 = vrot.lane.b32.xlu2 %v1151_v33, %s1103_s7 }
  0xbd   :  { %353 = vrot.lane.b32.xlu2 %v1149_v32, %s1103_s7 }
  0xc5   :  { %434 = vrot.lane.b32.xlu2 %v1149_v32, %s1104_s8 }
  0xff   :  { %v222_v34 = vpop.permute.xlu2 %221 }
 0x100   :  { %v228_v35 = vsel %vm226_vm2, %v222_v34, 0 }
 0x101   :  { %237 = vmatpush.bf16.msra.mxu3 %v228_v35 }
 0x105   :  { %262 = vmatpush.bf16.msrb.mxu3 %v941_v59 }
 0x107   :  { %v307_v36 = vpop.permute.xlu2 %306 }
 0x108   :  { %v312_v37 = vsel %vm226_vm2, %v307_v36, 0 }
 0x109   :  { %321 = vmatpush.bf16.msrb.mxu0 %v312_v37 }
 0x10d   :  { %427 = vmatpush.bf16.msra.mxu0 %v1189_v8 }
 0x10f   :  { %v356_v4 = vpop.permute.xlu2 %355 }
 0x110   :  { %v361_v7 = vsel %vm186_vm1, %v356_v4, 0 }
 0x117   :  { %v354_v28 = vpop.permute.xlu2 %353 }
 0x118   :  { %v275_v39 = vpop.permute.xlu0 %274 }
 0x119   :  { %v280_v42 = vsel %vm186_vm1, %v275_v39, 0 }
 0x11a   :  { %289 = vmatpush.bf16.xpose.msrb.mxu2 %v280_v42 }
 0x11f   :  { %v435_v39 = vpop.permute.xlu2 %434 }
 0x120   :  { %v270_v45 = vpop.permute.xlu0 %269 }
 0x121   :  { %899 = vmatmul.msk.bf16.vlgmr.msrb.gmra.mxu2 %vm186_vm1, %v270_v45 }
 0x12d   :  { %v202_v55 = vpop.f32.mrf.mxu2 }
 0x12e   :  { %v206_v56 = vsel %vm1172_vm5, %v202_v55, -1e+30 }
 0x12f   :  { %v208_v57 = vsel %vm207_vm6, %v206_v56, -inf }
 0x130   :  { %209 = vmax.xlane.f32.xlu1 %v208_v57 }
 0x135   :  { %v204_v58 = vpop.f32.mrf.mxu2 }
 0x1a3   :  { %v210_v60 = vpop.xlane.xlu1 %209 }
 0x1a4   :  { %v211_v61 = vsub.f32 %v206_v56, %v210_v60  ;;  %v291_v62 = vpop.f32.mrf.mxu2 }
 0x1a5   :  { %v295_v63 = vsel %vm1172_vm5, %v291_v62, -1e+30 }
 0x1a6   :  { %v212_v0 = vmul.f32 1.442695, %v211_v61  ;;  %v296_v1 = vsel %vm207_vm6, %v295_v63, -inf }
 0x1a7   :  { %297 = vmax.xlane.f32.xlu1 %v296_v1 }
 0x1a8   :  { %960 = vpow2.f32 %v212_v0 }
 0x1ac   :  { %v293_v2 = vpop.f32.mrf.mxu2 }
 0x1ae   :  { %v961_v3 = vpop.eup %960 }
 0x1af   :  { %v214_v5 = vsel %vm207_vm6, %v961_v3, 0.0  ;;  %v217_v6 = vpack.c.bf16 %v961_v3, %v961_v3 }
 0x1b0   :  { %215 = vadd.xlane.f32.xlu0 %v214_v5 }
 0x1b1   :  { %893 = vmatmul.msk.bf16.vlgmr.msra.gmra.mxu3 %vm207_vm6, %v217_v6 }
 0x1b2   :  { %370 = vmatpush.bf16.xpose.msra.mxu3 %v361_v7 }
 0x1c4   :  { %468 = vrot.lane.b32.xlu0 %v1149_v32, %s1105_s9 }
 0x1cc   :  { %387 = vrot.lane.b32.xlu0 %v1149_v32, %s1106_s10 }
 0x21a   :  { %v298_v9 = vpop.xlane.xlu1 %297 }
 0x21b   :  { %v299_v10 = vsub.f32 %v295_v63, %v298_v9  ;;  %v598_v9 = vunpack.c.l.b16 %v1192_v13 }
 0x21d   :  { %v300_v11 = vmul.f32 1.442695, %v299_v10  ;;  %v599_v10 = vpack.c.b16 %v598_v9, %v598_v9 }
 0x21f   :  { %962 = vpow2.f32 %v300_v11 }
 0x223   :  { %v216_v18 = vpop.xlane.xlu0 %215 }
 0x224   :  { %964 = vrcp.f32 %v216_v18 }
 0x225   :  { %v963_v14 = vpop.eup %962 }
 0x226   :  { %v302_v15 = vsel %vm207_vm6, %v963_v14, 0.0  ;;  %v305_v16 = vpack.c.bf16 %v963_v14, %v963_v14 }
 0x227   :  { %303 = vadd.xlane.f32.xlu1 %v302_v15 }
 0x228   :  { %900 = vmatmul.msk.bf16.vlgmr.msrb.gmra.mxu0 %vm207_vm6, %v305_v16 }
 0x229   :  { %534 = vmatpush.bf16.xpose.msrb.mxu0 %v525_v17 }
 0x22a   :  { %v965_v19 = vpop.eup %964 }
 0x234   :  { %v239_v20 = vpop.f32.mrf.mxu3 }
 0x235   :  { %v244_v21 = vmul.f32 %v965_v19, %v239_v20  ;;  %v1244_v20 = vld [vmem:[#allocation7 + $0x18] sm:$0xff] }
 0x236   :  { %v469_v22 = vpop.permute.xlu0 %468 }
 0x237   :  { %v245_v23 = vpack.c.bf16 %v244_v21, %v244_v21  ;;  %v474_v24 = vsel %vm226_vm2, %v469_v22, 0 }
 0x239   :  { %898 = vmatmul.msk.bf16.vlgmr.msrb.gmra.mxu3 %vm186_vm1, %v245_v23 }
 0x23a   :  { %483 = vmatpush.bf16.msrb.mxu3 %v474_v24 }
 0x23c   :  { %v241_v25 = vpop.f32.mrf.mxu3 }
 0x23e   :  { %v388_v26 = vpop.permute.xlu0 %387 }
 0x23f   :  { %v393_v27 = vsel %vm226_vm2, %v388_v26, 0 }
 0x240   :  { %402 = vmatpush.bf16.msra.mxu2 %v393_v27  ;;  %436 = vrot.lane.b32.xlu1 %v1151_v33, %s1104_s8 }
 0x244   :  { %508 = vmatpush.bf16.msrb.mxu2 %v1244_v20 }
 0x249   :  { %906 = vmatmul.msk.bf16.vlgmr.msra.gmra.mxu3 %vm186_vm1, %v354_v28 }
 0x24a   :  { %588 = vmatpush.bf16.msra.mxu3 %v941_v59 }
 0x29a   :  { %v304_v30 = vpop.xlane.xlu1 %303 }
 0x29b   :  { %966 = vrcp.f32 %v304_v30 }
 0x2a1   :  { %v967_v32 = vpop.eup %966 }
 0x2a5   :  { %v323_v34 = vpop.f32.mrf.mxu0 }
 0x2a6   :  { %v328_v35 = vmul.f32 %v967_v32, %v323_v34 }
 0x2a8   :  { %v329_v36 = vpack.c.bf16 %v328_v35, %v328_v35 }
 0x2aa   :  { %905 = vmatmul.msk.bf16.vlgmr.msrb.gmra.mxu1 %vm186_vm1, %v329_v36 }
 0x2ad   :  { %v325_v37 = vpop.f32.mrf.mxu0 }
 0x2b2   :  { %v437_v38 = vpop.permute.xlu1 %436 }
 0x2b3   :  { %v442_v33 = vsel %vm186_vm1, %v437_v38, 0 }
 0x2b4   :  { %451 = vmatpush.bf16.xpose.msra.mxu1 %v442_v33 }
 0x2bb   :  { %913 = vmatmul.msk.bf16.vlgmr.msra.gmra.mxu1 %vm186_vm1, %v435_v39 }
 0x2bc   :  { %v264_v40 = vpop.f32.mrf.mxu3 }
 0x2bd   :  { %v268_v50 = vadd.f32 %v1220_v49, %v264_v40 }
 0x2c4   :  { %v266_v41 = vpop.f32.mrf.mxu3 }
 0x2cc   :  { %v372_v42 = vpop.f32.mrf.mxu3 }
 0x2cd   :  { %v376_v43 = vsel %vm1172_vm5, %v372_v42, -1e+30 }
 0x2ce   :  { %v377_v44 = vsel %vm207_vm6, %v376_v43, -inf }
 0x2cf   :  { %378 = vmax.xlane.f32.xlu1 %v377_v44 }
 0x2d4   :  { %v374_v45 = vpop.f32.mrf.mxu3 }
 0x2e8   :  { %595 = vrot.lane.b32.xlu1 %v1213_v48, %s1101_s0 }
 0x327   :  { %v348_v51 = vpop.f32.mrf.mxu1 }
 0x328   :  { %v1223_v52 = vadd.f32 %v348_v51, %v268_v50 }
 0x32f   :  { %v350_v53 = vpop.f32.mrf.mxu1 }
 0x338   :  { %v453_v55 = vpop.f32.mrf.mxu1 }
 0x339   :  { %v457_v56 = vsel %vm1172_vm5, %v453_v55, -1e+30 }
 0x33a   :  { %v458_v57 = vsel %vm207_vm6, %v457_v56, -inf }
 0x33b   :  { %459 = vmax.xlane.f32.xlu2 %v458_v57 }
 0x340   :  { %v455_v58 = vpop.f32.mrf.mxu1 }
 0x342   :  { %v379_v59 = vpop.xlane.xlu1 %378 }
 0x343   :  { %v380_v60 = vsub.f32 %v376_v43, %v379_v59 }
 0x345   :  { %v381_v61 = vmul.f32 1.442695, %v380_v60 }
 0x347   :  { %968 = vpow2.f32 %v381_v61 }
 0x34d   :  { %v969_v62 = vpop.eup %968 }
 0x34e   :  { %v386_v63 = vpack.c.bf16 %v969_v62, %v969_v62  ;;  %v383_v0 = vsel %vm207_vm6, %v969_v62, 0.0 }
 0x34f   :  { %384 = vadd.xlane.f32.xlu0 %v383_v0 }
 0x350   :  { %907 = vmatmul.msk.bf16.vlgmr.msra.gmra.mxu2 %vm207_vm6, %v386_v63 }
 0x363   :  { %554 = vrot.lane.b32.xlu0 %v1213_v48, %s1098_s27 }
 0x36b   :  { %632 = vrot.lane.b32.xlu0 %v1213_v48, %s1102_s2 }
 0x3ae   :  { %v460_v1 = vpop.xlane.xlu2 %459 }
 0x3af   :  { %v461_v2 = vsub.f32 %v457_v56, %v460_v1 }
 0x3b1   :  { %v462_v3 = vmul.f32 1.442695, %v461_v2 }
 0x3b3   :  { %970 = vpow2.f32 %v462_v3 }
 0x3b9   :  { %v971_v4 = vpop.eup %970 }
 0x3ba   :  { %v467_v5 = vpack.c.bf16 %v971_v4, %v971_v4  ;;  %v464_v6 = vsel %vm207_vm6, %v971_v4, 0.0 }
 0x3bb   :  { %465 = vadd.xlane.f32.xlu2 %v464_v6 }
 0x3bc   :  { %914 = vmatmul.msk.bf16.vlgmr.msrb.gmra.mxu3 %vm207_vm6, %v467_v5 }
 0x3c2   :  { %v385_v7 = vpop.xlane.xlu0 %384 }
 0x3c3   :  { %972 = vrcp.f32 %v385_v7 }
 0x3c9   :  { %v973_v11 = vpop.eup %972 }
 0x3d3   :  { %v404_v12 = vpop.f32.mrf.mxu2  ;;  %600 = vrot.lane.b32.xlu2 %v599_v10, %s1101_s0 }
 0x3d4   :  { %v409_v14 = vmul.f32 %v973_v11, %v404_v12 }
 0x3d5   :  { %v555_v15 = vpop.permute.xlu0 %554 }
 0x3d6   :  { %v410_v16 = vpack.c.bf16 %v409_v14, %v409_v14  ;;  %v560_v17 = vsel %vm226_vm2, %v555_v15, 0 }
 0x3d7   :  { %569 = vmatpush.bf16.msrb.mxu1 %v560_v17 }
 0x3d8   :  { %912 = vmatmul.msk.bf16.vlgmr.msra.gmra.mxu0 %vm186_vm1, %v410_v16 }
 0x3db   :  { %666 = vmatpush.bf16.msra.mxu1 %v1204_v29  ;;  %v406_v18 = vpop.f32.mrf.mxu2  ;;  %v596_v29 = vpop.permute.xlu1 %595 }
 0x3dd   :  { %v633_v19 = vpop.permute.xlu0 %632 }
 0x3de   :  { %v638_v13 = vsel %vm226_vm2, %v633_v19, 0 }
 0x3df   :  { %647 = vmatpush.bf16.msra.mxu0 %v638_v13 }
 0x3e8   :  { %920 = vmatmul.msk.bf16.vlgmr.msrb.gmra.mxu0 %vm186_vm1, %v163_v46 }
 0x3e9   :  { %741 = vmatpush.bf16.msrb.mxu0 %v1189_v8 }
 0x42e   :  { %v466_v21 = vpop.xlane.xlu2 %465 }
 0x42f   :  { %974 = vrcp.f32 %v466_v21 }
 0x435   :  { %v975_v24 = vpop.eup %974 }
 0x436   :  { %v601_v22 = vpop.permute.xlu2 %600 }
 0x437   :  { %v606_v23 = vsel %vm186_vm1, %v601_v22, 0 }
 0x438   :  { %615 = vmatpush.bf16.xpose.msra.mxu2 %v606_v23 }
 0x43f   :  { %v485_v25 = vpop.f32.mrf.mxu3 }
 0x440   :  { %v490_v26 = vmul.f32 %v975_v24, %v485_v25 }
 0x442   :  { %v491_v27 = vpack.c.bf16 %v490_v26, %v490_v26 }
 0x444   :  { %919 = vmatmul.msk.bf16.vlgmr.msrb.gmra.mxu2 %vm186_vm1, %v491_v27 }
 0x447   :  { %v487_v28 = vpop.f32.mrf.mxu3 }
 0x454   :  { %923 = vmatmul.msk.bf16.vlgmr.msra.gmra.mxu2 %vm186_vm1, %v596_v29 }
 0x455   :  { %v429_v8 = vpop.f32.mrf.mxu0 }
 0x456   :  { %v433_v30 = vadd.f32 %v429_v8, %v1223_v52 }
 0x45d   :  { %v431_v31 = vpop.f32.mrf.mxu0 }
 0x465   :  { %v536_v32 = vpop.f32.mrf.mxu0 }
 0x466   :  { %v540_v34 = vsel %vm1172_vm5, %v536_v32, -1e+30 }
 0x467   :  { %v541_v35 = vsel %vm207_vm6, %v540_v34, -inf }
 0x468   :  { %542 = vmax.xlane.f32.xlu2 %v541_v35 }
 0x46d   :  { %v538_v36 = vpop.f32.mrf.mxu0 }
 0x4c7   :  { %v510_v37 = vpop.f32.mrf.mxu2 }
 0x4c8   :  { %v1254_v38 = vadd.f32 %v510_v37, %v433_v30 }
 0x4cf   :  { %v512_v33 = vpop.f32.mrf.mxu2 }
 0x4d7   :  { %v617_v39 = vpop.f32.mrf.mxu2 }
 0x4d8   :  { %v621_v40 = vsel %vm1172_vm5, %v617_v39, -1e+30 }
 0x4d9   :  { %v622_v41 = vsel %vm207_vm6, %v621_v40, -inf }
 0x4da   :  { %623 = vmax.xlane.f32.xlu1 %v622_v41 }
 0x4db   :  { %v543_v42 = vpop.xlane.xlu2 %542 }
 0x4dc   :  { %v544_v43 = vsub.f32 %v540_v34, %v543_v42 }
 0x4de   :  { %v545_v44 = vmul.f32 1.442695, %v544_v43 }
 0x4df   :  { %v619_v45 = vpop.f32.mrf.mxu2 }
 0x4e0   :  { %976 = vpow2.f32 %v545_v44 }
 0x4e6   :  { %v977_v46 = vpop.eup %976 }
 0x4e7   :  { %v550_v47 = vpack.c.bf16 %v977_v46, %v977_v46  ;;  %v547_v50 = vsel %vm207_vm6, %v977_v46, 0.0 }
 0x4e8   :  { %548 = vadd.xlane.f32.xlu2 %v547_v50 }
 0x4e9   :  { %921 = vmatmul.msk.bf16.vlgmr.msrb.gmra.mxu1 %vm207_vm6, %v550_v47 }
 0x4f3   :  { %675 = vrot.lane.b32.xlu1 %v599_v10, %s1103_s7 }
 0x4fb   :  { %673 = vrot.lane.b32.xlu1 %v1213_v48, %s1103_s7 }
 0x500   :  { %750 = vrot.lane.b32.xlu2 %v599_v10, %s1104_s8 }
 0x508   :  { %748 = vrot.lane.b32.xlu2 %v1213_v48, %s1104_s8 }
 0x54d   :  { %v624_v51 = vpop.xlane.xlu1 %623 }
 0x54e   :  { %v625_v52 = vsub.f32 %v621_v40, %v624_v51 }
 0x550   :  { %v626_v53 = vmul.f32 1.442695, %v625_v52 }
 0x552   :  { %978 = vpow2.f32 %v626_v53 }
 0x558   :  { %v979_v55 = vpop.eup %978 }
 0x559   :  { %v631_v56 = vpack.c.bf16 %v979_v55, %v979_v55  ;;  %v628_v57 = vsel %vm207_vm6, %v979_v55, 0.0 }
 0x55a   :  { %629 = vadd.xlane.f32.xlu0 %v628_v57 }
 0x55b   :  { %924 = vmatmul.msk.bf16.vlgmr.msra.gmra.mxu0 %vm207_vm6, %v631_v56  ;;  %v549_v58 = vpop.xlane.xlu2 %548 }
 0x55c   :  { %980 = vrcp.f32 %v549_v58 }
 0x562   :  { %v981_v62 = vpop.eup %980 }
 0x563   :  { %v751_v59 = vpop.permute.xlu2 %750 }
 0x564   :  { %v756_v60 = vsel %vm186_vm1, %v751_v59, 0 }
 0x565   :  { %v676_v61 = vpop.permute.xlu1 %675  ;;  %765 = vmatpush.bf16.xpose.msrb.mxu1 %v756_v60 }
 0x566   :  { %v681_v63 = vsel %vm186_vm1, %v676_v61, 0  ;;  %v571_v0 = vpop.f32.mrf.mxu1 }
 0x567   :  { %v576_v1 = vmul.f32 %v981_v62, %v571_v0  ;;  %690 = vmatpush.bf16.xpose.msrb.mxu3 %v681_v63 }
 0x569   :  { %v577_v2 = vpack.c.bf16 %v576_v1, %v576_v1 }
 0x56b   :  { %922 = vmatmul.msk.bf16.vlgmr.msra.gmra.mxu3 %vm186_vm1, %v577_v2 }
 0x56d   :  { %v674_v4 = vpop.permute.xlu1 %673 }
 0x56e   :  { %782 = vrot.lane.b32.xlu0 %v1213_v48, %s1105_s9  ;;  %v573_v3 = vpop.f32.mrf.mxu1 }
 0x576   :  { %707 = vrot.lane.b32.xlu0 %v1213_v48, %s1106_s10  ;;  %v749_v48 = vpop.permute.xlu2 %748 }
 0x57b   :  { %926 = vmatmul.msk.bf16.vlgmr.msrb.gmra.mxu3 %vm186_vm1, %v674_v4 }
 0x5cd   :  { %v630_v5 = vpop.xlane.xlu0 %629 }
 0x5ce   :  { %982 = vrcp.f32 %v630_v5 }
 0x5d4   :  { %v983_v6 = vpop.eup %982 }
 0x5d8   :  { %v649_v7 = vpop.f32.mrf.mxu0 }
 0x5d9   :  { %v654_v9 = vmul.f32 %v983_v6, %v649_v7 }
 0x5db   :  { %v655_v10 = vpack.c.bf16 %v654_v9, %v654_v9 }
 0x5dd   :  { %925 = vmatmul.msk.bf16.vlgmr.msra.gmra.mxu1 %vm186_vm1, %v655_v10 }
 0x5e0   :  { %v783_v11 = vpop.permute.xlu0 %782  ;;  %v651_v12 = vpop.f32.mrf.mxu0 }
 0x5e1   :  { %v788_v14 = vsel %vm226_vm2, %v783_v11, 0 }
 0x5e2   :  { %797 = vmatpush.bf16.msra.mxu3 %v788_v14 }
 0x5e8   :  { %v708_v15 = vpop.permute.xlu0 %707 }
 0x5e9   :  { %v713_v16 = vsel %vm226_vm2, %v708_v15, 0 }
 0x5ea   :  { %722 = vmatpush.bf16.msrb.mxu2 %v713_v16 }
 0x5ed   :  { %929 = vmatmul.msk.bf16.vlgmr.msrb.gmra.mxu1 %vm186_vm1, %v749_v48 }
 0x5ee   :  { %816 = vmatpush.bf16.msra.mxu2 %v1244_v20  ;;  %v590_v17 = vpop.f32.mrf.mxu3 }
 0x5ef   :  { %v594_v23 = vadd.f32 %v1220_v49, %v590_v17  ;;  %v516_v49 = vrot.slane %v1254_v38, 4 }
 0x5f6   :  { %v592_v18 = vpop.f32.mrf.mxu3 }
 0x5fe   :  { %v692_v19 = vpop.f32.mrf.mxu3 }
 0x5ff   :  { %v696_v13 = vsel %vm1172_vm5, %v692_v19, -1e+30 }
 0x600   :  { %v697_v21 = vsel %vm207_vm6, %v696_v13, -inf }
 0x601   :  { %698 = vmax.xlane.f32.xlu2 %v697_v21 }
 0x606   :  { %v694_v22 = vpop.f32.mrf.mxu3 }
 0x65a   :  { %v668_v24 = vpop.f32.mrf.mxu1 }
 0x65b   :  { %v672_v25 = vadd.f32 %v668_v24, %v594_v23 }
 0x662   :  { %v670_v26 = vpop.f32.mrf.mxu1 }
 0x66a   :  { %v767_v27 = vpop.f32.mrf.mxu1 }
 0x66b   :  { %v771_v20 = vsel %vm1172_vm5, %v767_v27, -1e+30 }
 0x66c   :  { %v772_v28 = vsel %vm207_vm6, %v771_v20, -inf }
 0x66d   :  { %773 = vmax.xlane.f32.xlu1 %v772_v28 }
 0x672   :  { %v769_v29 = vpop.f32.mrf.mxu1 }
 0x674   :  { %v699_v8 = vpop.xlane.xlu2 %698 }
 0x675   :  { %v700_v30 = vsub.f32 %v696_v13, %v699_v8 }
 0x677   :  { %v701_v31 = vmul.f32 1.442695, %v700_v30 }
 0x679   :  { %984 = vpow2.f32 %v701_v31 }
 0x67f   :  { %v985_v32 = vpop.eup %984 }
 0x680   :  { %v706_v34 = vpack.c.bf16 %v985_v32, %v985_v32  ;;  %v703_v35 = vsel %vm207_vm6, %v985_v32, 0.0 }
 0x681   :  { %704 = vadd.xlane.f32.xlu1 %v703_v35 }
 0x682   :  { %927 = vmatmul.msk.bf16.vlgmr.msrb.gmra.mxu2 %vm207_vm6, %v706_v34 }
 0x69a   :  { %517 = vrot.lane.b32.xlu1 %v516_v49, %s1098_s27 }
 0x6e0   :  { %v774_v54 = vpop.xlane.xlu1 %773 }
 0x6e1   :  { %v775_v36 = vsub.f32 %v771_v20, %v774_v54 }
 0x6e3   :  { %v776_v37 = vmul.f32 1.442695, %v775_v36 }
 0x6e5   :  { %986 = vpow2.f32 %v776_v37 }
 0x6eb   :  { %v987_v33 = vpop.eup %986 }
 0x6ec   :  { %v781_v39 = vpack.c.bf16 %v987_v33, %v987_v33  ;;  %v778_v40 = vsel %vm207_vm6, %v987_v33, 0.0 }
 0x6ed   :  { %779 = vadd.xlane.f32.xlu0 %v778_v40 }
 0x6ee   :  { %930 = vmatmul.msk.bf16.vlgmr.msra.gmra.mxu3 %vm207_vm6, %v781_v39 }
 0x6f4   :  { %v705_v41 = vpop.xlane.xlu1 %704 }
 0x6f5   :  { %988 = vrcp.f32 %v705_v41 }
 0x6fb   :  { %v989_v42 = vpop.eup %988 }
 0x705   :  { %v724_v43 = vpop.f32.mrf.mxu2 }
 0x706   :  { %v729_v44 = vmul.f32 %v989_v42, %v724_v43 }
 0x708   :  { %v730_v45 = vpack.c.bf16 %v729_v44, %v729_v44 }
 0x70a   :  { %928 = vmatmul.msk.bf16.vlgmr.msrb.gmra.mxu0 %vm186_vm1, %v730_v45 }
 0x70c   :  { %v518_v63 = vpop.permute.xlu1 %517 }
 0x70d   :  { %v726_v46 = vpop.f32.mrf.mxu2  ;;  %v520_v3 = vsel %vm130_vm0, %v1254_v38, %v518_v63 }
 0x760   :  { %v780_v47 = vpop.xlane.xlu0 %779 }
 0x761   :  { %990 = vrcp.f32 %v780_v47 }
 0x767   :  { %v991_v50 = vpop.eup %990 }
 0x771   :  { %v799_v51 = vpop.f32.mrf.mxu3 }
 0x772   :  { %v804_v52 = vmul.f32 %v991_v50, %v799_v51 }
 0x774   :  { %v805_v53 = vpack.c.bf16 %v804_v52, %v804_v52 }
 0x776   :  { %931 = vmatmul.msk.bf16.vlgmr.msra.gmra.mxu2 %vm186_vm1, %v805_v53 }
 0x779   :  { %v801_v55 = vpop.f32.mrf.mxu3 }
 0x787   :  { %v743_v56 = vpop.f32.mrf.mxu0 }
 0x788   :  { %v747_v57 = vadd.f32 %v743_v56, %v672_v25 }
 0x78f   :  { %v745_v58 = vpop.f32.mrf.mxu0 }
 0x7f9   :  { %v818_v59 = vpop.f32.mrf.mxu2 }
 0x7fa   :  { %v822_v60 = vadd.f32 %v818_v59, %v747_v57 }
 0x7fc   :  { %v824_v61 = vrot.slane %v822_v60, 4 }
 0x7fe   :  { %825 = vrot.lane.b32.xlu2 %v824_v61, %s1098_s27 }
 0x801   :  { %v820_v62 = vpop.f32.mrf.mxu2 }
 0x858   :  { %v826_v0 = vpop.permute.xlu2 %825 }
 0x859   :  { %v828_v1 = vsel %vm130_vm0, %v822_v60, %v826_v0 }
 0x85a   :  { %v830_v2 = vrot.slane %v828_v1, 4 }
 0x85c   :  { %v832_v4 = vsel %vm226_vm2, %v520_v3, %v830_v2 }
 0x85d   :  { %833 = vst [vmem:[#allocation8] sm:$0xff] %v832_v4 }
 0x85e   :  { %844 = dma.vmem_to_hbm [thread:$0]  %s840_s13, 128, %s842_s16, [#allocation4]  }
 0x85f   :  { %1092 = dma.done.wait [#allocation4], 128  }
 0x860   :  { %1093 = vsyncadd [#allocation4], 4294967168 }
 0x861   :  { %849 = vsyncpa [#allocation3], 1 }
 0x862   :  { %850 = vsyncpa [#allocation6], 1 }
 0x863   :  { %851 = vsyncpa [#allocation4], 1 }

</bundles_post_ra>
